<compile_context>
chip_gen: v7x
topology: tpu7x:2x2x1
jax: 0.10.0
libtpu: 0.0.40
codegen_flags: <defaults>
</compile_context>

<pallas_src>
import jax
import jax.numpy as jnp
from jax.experimental import pallas as pl
from jax.experimental.pallas import tpu as pltpu


def _min_disc_kernel_packed(fg_ref, fd_ref, w_ref, b_ref, out_ref):
    # fg_ref / fd_ref: (TBp, 128) packed tiles (P logical rows of width H per row).
    # w_ref: (2, 128, P) block-diagonal weights (index 0 = w_g, index 1 = w_d).
    # b_ref: (1,) SMEM scalar bias.  out_ref: (TBp, P) lane-dense output tile.
    fg = jax.nn.relu(fg_ref[...].astype(jnp.float32))                 # VPU
    fd = jax.nn.relu(fd_ref[...].astype(jnp.float32))                 # VPU
    y = (
        jnp.dot(fg, w_ref[0], preferred_element_type=jnp.float32)     # MXU (idle otherwise)
        + jnp.dot(fd, w_ref[1], preferred_element_type=jnp.float32)
        + b_ref[0]                                                     # SMEM scalar
    )                                                                  # (TBp, P)
    # F.normalize(., p=2, dim=1) on width-1 logical rows: y / max(|y|, 1e-12).
    # NOTE: rows are independent; garbage rows from a partial last block are
    # masked on the output write, so OOB input reads are harmless.
    out_ref[...] = (y / jnp.maximum(jnp.abs(y), 1e-12)).astype(out_ref.dtype)


def _min_disc_kernel_rowwise(fg_ref, fd_ref, w_ref, b_ref, out_ref):
    # Fallback (no lane packing): fg/fd (TB, H), w (2, H), out (TB, 1).
    fg = jax.nn.relu(fg_ref[...].astype(jnp.float32))
    fd = jax.nn.relu(fd_ref[...].astype(jnp.float32))
    w = w_ref[...]
    # Single fused lane reduce instead of two.
    y = jnp.sum(fg * w[0:1, :] + fd * w[1:2, :], axis=-1, keepdims=True) + b_ref[0]
    out_ref[...] = (y / jnp.maximum(jnp.abs(y), 1e-12)).astype(out_ref.dtype)


def _pick_batch_tile(nrows, cap):
    """Batch-tile (second-to-last dim) selection.

    Keeps tiles (8,128)-legal, prefers >= 2 grid tiles (so the 'parallel' axis
    shards across both TensorCores on v7x) and caps the tile so 2 inputs x 2
    pipeline buffers stay well inside the scoped VMEM budget.
    """
    if nrows <= cap:
        half = nrows // 2
        if nrows % 2 == 0 and half >= 8 and half % 8 == 0:
            return half          # two full tiles -> megacore sharding on v7x
        return nrows             # full-extent tile (always layout-legal)
    return cap                   # multiple of 8; last block may be partial (masked writes)


def min_discriminator_forward(f_g, f_d, weight, bias):
    """f_g, f_d: (B, H); weight: (1, 2H); bias: (1,). Returns (B, 1) float32."""
    B, H = f_g.shape
    w_g = weight[:, :H].astype(jnp.float32)       # (1, H)
    w_d = weight[:, H:].astype(jnp.float32)       # (1, H)
    b = bias.reshape(1).astype(jnp.float32)       # -> SMEM scalar

    compiler_params = pltpu.CompilerParams(
        dimension_semantics=("parallel",),        # batch tiles are independent
        vmem_limit_bytes=32 * 1024 * 1024,        # above v5e's 16 MiB default scope
    )

    pack = (H <= 128) and (128 % H == 0) and (B % (128 // H) == 0)
    if pack:
        P = 128 // H                              # logical rows per 128-lane row
        Bp = B // P
        fg_p = f_g.reshape(Bp, P * H)             # zero-copy, row-major contiguous
        fd_p = f_d.reshape(Bp, P * H)
        # Block-diagonal weights: column k holds w_{g,d} in rows [k*H, (k+1)*H).
        eye = jnp.eye(P, dtype=jnp.float32)
        w_seg = jnp.stack(
            [jnp.kron(eye, w_g.reshape(H, 1)),
             jnp.kron(eye, w_d.reshape(H, 1))],
            axis=0,
        )                                         # (2, 128, P), resident in VMEM

        TBp = _pick_batch_tile(Bp, cap=8192)      # 8192 * 512 B = 4 MiB per input buffer
        grid = (pl.cdiv(Bp, TBp),)
        out_p = pl.pallas_call(
            _min_disc_kernel_packed,
            out_shape=jax.ShapeDtypeStruct((Bp, P), jnp.float32),
            grid_spec=pltpu.PrefetchScalarGridSpec(
                num_scalar_prefetch=0,
                grid=grid,
                in_specs=[
                    pl.BlockSpec((TBp, P * H), lambda i: (i, 0)),       # f_g packed tile
                    pl.BlockSpec((TBp, P * H), lambda i: (i, 0)),       # f_d packed tile
                    pl.BlockSpec((2, P * H, P), lambda i: (0, 0, 0)),   # fused weights (resident)
                    pl.BlockSpec(memory_space=pltpu.MemorySpace.SMEM),  # bias scalar
                ],
                out_specs=pl.BlockSpec((TBp, P), lambda i: (i, 0)),     # lane-dense output
            ),
            compiler_params=compiler_params,
        )(fg_p, fd_p, w_seg, b)
        return out_p.reshape(B, 1)                # zero-copy back to (B, 1)

    # Fallback for shapes that don't pack evenly into 128 lanes.
    w2 = jnp.concatenate([w_g, w_d], axis=0)      # (2, H), single resident stream
    h_pad = ((H + 127) // 128) * 128
    cap = max(8, (min(8192, (6 * 1024 * 1024) // (h_pad * 4)) // 8) * 8)
    TB = _pick_batch_tile(B, cap=cap)
    grid = (pl.cdiv(B, TB),)
    out = pl.pallas_call(
        _min_disc_kernel_rowwise,
        out_shape=jax.ShapeDtypeStruct((B, 1), jnp.float32),
        grid_spec=pltpu.PrefetchScalarGridSpec(
            num_scalar_prefetch=0,
            grid=grid,
            in_specs=[
                pl.BlockSpec((TB, H), lambda i: (i, 0)),
                pl.BlockSpec((TB, H), lambda i: (i, 0)),
                pl.BlockSpec((2, H), lambda i: (0, 0)),
                pl.BlockSpec(memory_space=pltpu.MemorySpace.SMEM),
            ],
            out_specs=pl.BlockSpec((TB, 1), lambda i: (i, 0)),
        ),
        compiler_params=compiler_params,
    )(f_g, f_d, w2, b)
    return out


if __name__ == "__main__":
    # Small shapes consistent with the module: batch=8, hidden_l=32.
    B, H = 8, 32
    initrange = 0.1

    key = jax.random.PRNGKey(0)
    k_fg, k_fd, k_w = jax.random.split(key, 3)

    f_g = jax.random.normal(k_fg, (B, H), dtype=jnp.float32)
    f_d = jax.random.normal(k_fd, (B, H), dtype=jnp.float32)

    # Deterministic parameter init mirroring init_weights():
    #   weight ~ U(-initrange, initrange), bias = 0
    weight = jax.random.uniform(
        k_w, (1, 2 * H), minval=-initrange, maxval=initrange, dtype=jnp.float32
    )
    bias = jnp.zeros((1,), dtype=jnp.float32)

    out = min_discriminator_forward(f_g, f_d, weight, bias)
    out = jax.block_until_ready(out)

    # Pure-JAX reference check.
    h = jnp.concatenate([f_g, f_d], axis=1)
    y_ref = jax.nn.relu(h) @ weight.T + bias
    n_ref = jnp.sqrt(jnp.sum(y_ref * y_ref, axis=1, keepdims=True))
    y_ref = y_ref / jnp.maximum(n_ref, 1e-12)
    assert out.shape == (B, 1)
    assert jnp.allclose(out, y_ref, atol=1e-5, rtol=1e-5)

    print("KERNEL_OK")
</pallas_src>

<mosaic_0001>
module attributes {stable_mosaic.version = 11 : i64} {
  func.func @_min_disc_kernel_packed(%arg0: i32, %arg1: memref<2x128xf32, #tpu.memory_space<vmem>>, %arg2: memref<2x128xf32, #tpu.memory_space<vmem>>, %arg3: memref<2x128x4xf32, #tpu.memory_space<vmem>>, %arg4: memref<1xf32, #tpu.memory_space<smem>>, %arg5: memref<2x4xf32, #tpu.memory_space<vmem>>) attributes {dimension_semantics = [#tpu.dimension_semantics<parallel>], iteration_bounds = array<i64: 1>, scalar_prefetch = 0 : i64, scratch_operands = 0 : i64, tpu.core_type = #tpu.core_type<tc>, window_params = [{transform_indices = @transform_0, window_bounds = array<i64: 2, 128>}, {transform_indices = @transform_1, window_bounds = array<i64: 2, 128>}, {pipeline_mode = #tpu.pipeline_mode<synchronous>, transform_indices = @transform_2, window_bounds = array<i64: 2, 128, 4>}, {transform_indices = @transform_3, window_bounds = array<i64: 1>}, {transform_indices = @transform_4, window_bounds = array<i64: 2, 4>}]} {
    %c0 = arith.constant 0 : index
    %c0_0 = arith.constant 0 : index
    %0 = vector.load %arg1[%c0, %c0_0] : memref<2x128xf32, #tpu.memory_space<vmem>>, vector<2x128xf32>
    %cst = arith.constant 0.000000e+00 : f32
    %1 = vector.broadcast %cst : f32 to vector<2x128xf32>
    %2 = arith.maximumf %0, %1 : vector<2x128xf32>
    %c0_1 = arith.constant 0 : index
    %c0_2 = arith.constant 0 : index
    %3 = vector.load %arg2[%c0_1, %c0_2] : memref<2x128xf32, #tpu.memory_space<vmem>>, vector<2x128xf32>
    %cst_3 = arith.constant 0.000000e+00 : f32
    %4 = vector.broadcast %cst_3 : f32 to vector<2x128xf32>
    %5 = arith.maximumf %3, %4 : vector<2x128xf32>
    %c0_4 = arith.constant 0 : index
    %c0_5 = arith.constant 0 : index
    %c0_6 = arith.constant 0 : index
    %6 = vector.load %arg3[%c0_4, %c0_5, %c0_6] : memref<2x128x4xf32, #tpu.memory_space<vmem>>, vector<1x128x4xf32>
    %7 = vector.shape_cast %6 : vector<1x128x4xf32> to vector<128x4xf32>
    %cst_7 = arith.constant dense<0.000000e+00> : vector<2x4xf32>
    %8 = tpu.matmul %2, %7, %cst_7 {dimension_numbers = #tpu.dot_dimension_numbers<[1], [0], [0], [1], [0, 0, 1, 1], [], []>} : vector<2x128xf32>, vector<128x4xf32>, vector<2x4xf32> -> vector<2x4xf32>
    %c1 = arith.constant 1 : index
    %c0_8 = arith.constant 0 : index
    %c0_9 = arith.constant 0 : index
    %9 = vector.load %arg3[%c1, %c0_8, %c0_9] : memref<2x128x4xf32, #tpu.memory_space<vmem>>, vector<1x128x4xf32>
    %10 = vector.shape_cast %9 : vector<1x128x4xf32> to vector<128x4xf32>
    %cst_10 = arith.constant dense<0.000000e+00> : vector<2x4xf32>
    %11 = tpu.matmul %5, %10, %cst_10 {dimension_numbers = #tpu.dot_dimension_numbers<[1], [0], [0], [1], [0, 0, 1, 1], [], []>} : vector<2x128xf32>, vector<128x4xf32>, vector<2x4xf32> -> vector<2x4xf32>
    %12 = arith.addf %8, %11 : vector<2x4xf32>
    %c0_11 = arith.constant 0 : index
    %13 = memref.load %arg4[%c0_11] : memref<1xf32, #tpu.memory_space<smem>>
    %14 = vector.broadcast %13 : f32 to vector<2x4xf32>
    %15 = arith.addf %12, %14 : vector<2x4xf32>
    %16 = math.absf %15 : vector<2x4xf32>
    %cst_12 = arith.constant 9.99999996E-13 : f32
    %17 = vector.broadcast %cst_12 : f32 to vector<2x4xf32>
    %18 = arith.maximumf %16, %17 : vector<2x4xf32>
    %19 = arith.divf %15, %18 : vector<2x4xf32>
    %c0_13 = arith.constant 0 : index
    %c0_14 = arith.constant 0 : index
    %20 = vector.load %arg5[%c0_13, %c0_14] : memref<2x4xf32, #tpu.memory_space<vmem>>, vector<2x4xf32>
    tpu.vector_store %arg5[%c0_13, %c0_14], %19 {strides = array<i32>} : memref<2x4xf32, #tpu.memory_space<vmem>>, vector<2x4xf32>,
    return
  }
  func.func @transform_0(%arg0: i32) -> (i32, i32) {
    %c0_i32 = arith.constant 0 : i32
    %c0_i32_0 = arith.constant 0 : i32
    return %arg0, %c0_i32 : i32, i32
  }
  func.func @transform_1(%arg0: i32) -> (i32, i32) {
    %c0_i32 = arith.constant 0 : i32
    %c0_i32_0 = arith.constant 0 : i32
    return %arg0, %c0_i32 : i32, i32
  }
  func.func @transform_2(%arg0: i32) -> (i32, i32, i32) {
    %c0_i32 = arith.constant 0 : i32
    %c0_i32_0 = arith.constant 0 : i32
    %c0_i32_1 = arith.constant 0 : i32
    %c0_i32_2 = arith.constant 0 : i32
    return %c0_i32, %c0_i32_0, %c0_i32_1 : i32, i32, i32
  }
  func.func @transform_3(%arg0: i32) -> i32 {
    %c0_i32 = arith.constant 0 : i32
    %c0_i32_0 = arith.constant 0 : i32
    return %c0_i32 : i32
  }
  func.func @transform_4(%arg0: i32) -> (i32, i32) {
    %c0_i32 = arith.constant 0 : i32
    %c0_i32_0 = arith.constant 0 : i32
    return %arg0, %c0_i32 : i32, i32
  }
}

</mosaic_0001>

<bundles_post_ra>
// kernel: tpu_custom_call.1
= control target key start
LH: loop header
LB: loop body
LE: loop exit
PB: predicated region body
PF: predicated region fallthrough
CT: control target
= control target key end

     0   :  { %v417_v3 = vmov 0.0|0.0   ;;  %vm418_vm0 = vmmov 0   ;;  %v419_v11 = vmov 0.0   ;;  %s579_s0 = inlined_call_operand.vmem [shape: f32[2,128], index: 0, kind: input, shape index: {}]   ;;  %s580_s1 = inlined_call_operand.vmem [shape: f32[2,128], index: 1, kind: input, shape index: {}]   ;;  %s581_s2 = inlined_call_operand.vmem [shape: f32[2,128,4], index: 2, kind: input, shape index: {}]   ;;  %s582_s3 = inlined_call_operand.<no memory space> [shape: f32[1], index: 3, kind: input, shape index: {}]   ;;  %s583_s4 = inlined_call_operand.hbm [shape: f32[2,4], index: 4, kind: output, shape index: {}]  }
   0x1   :  { %v219_v0 = vld [vmem:[%s581_s2 + $0x80] sm:$0xff]  ;;  %v220_v1 = vld [vmem:[%s581_s2 + $0x88] sm:$0xff]  ;;  %339 = vmatprep.subr.bf16.mxu0 %v417_v3  ;;  %363 = vmatprep.subr.bf16.mxu1 %v417_v3  ;;  %v221_v6 = vld [vmem:[%s581_s2 + $0x90] sm:$0xff] }
   0x2   :  { %v23_v2 = vld [vmem:[%s581_s2] sm:$0xff]  ;;  %v340_v4 = vpack.c.bf16 %v220_v1, %v219_v0  ;;  %v24_v5 = vld [vmem:[%s581_s2 + $0x8] sm:$0xff]  ;;  %v222_v7 = vld [vmem:[%s581_s2 + $0x98] sm:$0xff]  ;;  %301 = vmatprep.mubr.msk.f32.mxu0 %vm418_vm0, %v419_v11  ;;  %336 = vmatprep.mubr.msk.f32.mxu1 %vm418_vm0, %v419_v11 }
   0x3   :  { %v364_v8 = vpack.c.bf16 %v24_v5, %v23_v2  ;;  %v25_v9 = vld [vmem:[%s581_s2 + $0x10] sm:$0xff]  ;;  %v26_v10 = vld [vmem:[%s581_s2 + $0x18] sm:$0xff]  ;;  %v343_v12 = vpack.c.bf16 %v222_v7, %v221_v6  ;;  %v223_v14 = vld [vmem:[%s581_s2 + $0xa0] sm:$0xff] }
   0x4   :  { %341 = vmatpush3.bf16.msra.mxu0 %v340_v4  ;;  %v367_v13 = vpack.c.bf16 %v26_v10, %v25_v9  ;;  %v224_v15 = vld [vmem:[%s581_s2 + $0xa8] sm:$0xff]  ;;  %v27_v16 = vld [vmem:[%s581_s2 + $0x20] sm:$0xff]  ;;  %v225_v20 = vld [vmem:[%s581_s2 + $0xb0] sm:$0xff] }
   0x5   :  { %365 = vmatpush3.bf16.msra.mxu1 %v364_v8  ;;  %342 = vmatprep.subr.bf16.mxu0 %v417_v3  ;;  %v28_v17 = vld [vmem:[%s581_s2 + $0x28] sm:$0xff]  ;;  %v346_v18 = vpack.c.bf16 %v224_v15, %v223_v14  ;;  %v226_v21 = vld [vmem:[%s581_s2 + $0xb8] sm:$0xff]  ;;  %v29_v22 = vld [vmem:[%s581_s2 + $0x30] sm:$0xff] }
   0x6   :  { %366 = vmatprep.subr.bf16.mxu1 %v417_v3  ;;  %v370_v19 = vpack.c.bf16 %v28_v17, %v27_v16  ;;  %v30_v23 = vld [vmem:[%s581_s2 + $0x38] sm:$0xff]  ;;  %v349_v24 = vpack.c.bf16 %v226_v21, %v225_v20 }
   0x8   :  { %344 = vmatpush3.bf16.msra.mxu0 %v343_v12 }
   0x9   :  { %368 = vmatpush3.bf16.msra.mxu1 %v367_v13  ;;  %345 = vmatprep.subr.bf16.mxu0 %v417_v3 }
   0xa   :  { %369 = vmatprep.subr.bf16.mxu1 %v417_v3 }
   0xc   :  { %347 = vmatpush3.bf16.msra.mxu0 %v346_v18 }
   0xd   :  { %10 = vsyncpa [#allocation4], 0  ;;  %371 = vmatpush3.bf16.msra.mxu1 %v370_v19  ;;  %348 = vmatprep.subr.bf16.mxu0 %v417_v3  ;;  %v373_v25 = vpack.c.bf16 %v30_v23, %v29_v22  ;;  %v227_v26 = vld [vmem:[%s581_s2 + $0xc0] sm:$0xff]  ;;  %v228_v27 = vld [vmem:[%s581_s2 + $0xc8] sm:$0xff]  ;;  %v197_v56 = vstv %s582_s3  ;;  %vm203_vm1 = vcmask 25600  }
   0xe   :  { %372 = vmatprep.subr.bf16.mxu1 %v417_v3  ;;  %v31_v28 = vld [vmem:[%s581_s2 + $0x40] sm:$0xff]  ;;  %v32_v29 = vld [vmem:[%s581_s2 + $0x48] sm:$0xff]  ;;  %v352_v30 = vpack.c.bf16 %v228_v27, %v227_v26  ;;  %v229_v32 = vld [vmem:[%s581_s2 + $0xd0] sm:$0xff] }
   0xf   :  { %v376_v31 = vpack.c.bf16 %v32_v29, %v31_v28  ;;  %v230_v33 = vld [vmem:[%s581_s2 + $0xd8] sm:$0xff]  ;;  %v33_v34 = vld [vmem:[%s581_s2 + $0x50] sm:$0xff]  ;;  %v231_v38 = vld [vmem:[%s581_s2 + $0xe0] sm:$0xff] }
  0x10   :  { %350 = vmatpush3.bf16.msra.mxu0 %v349_v24  ;;  %v34_v35 = vld [vmem:[%s581_s2 + $0x58] sm:$0xff]  ;;  %v355_v36 = vpack.c.bf16 %v230_v33, %v229_v32  ;;  %v232_v39 = vld [vmem:[%s581_s2 + $0xe8] sm:$0xff]  ;;  %v35_v40 = vld [vmem:[%s581_s2 + $0x60] sm:$0xff] }
  0x11   :  { %374 = vmatpush3.bf16.msra.mxu1 %v373_v25  ;;  %351 = vmatprep.subr.bf16.mxu0 %v417_v3  ;;  %v379_v37 = vpack.c.bf16 %v34_v35, %v33_v34  ;;  %v36_v41 = vld [vmem:[%s581_s2 + $0x68] sm:$0xff]  ;;  %v358_v42 = vpack.c.bf16 %v232_v39, %v231_v38  ;;  %v233_v44 = vld [vmem:[%s581_s2 + $0xf0] sm:$0xff]  ;;  %v234_v45 = vld [vmem:[%s581_s2 + $0xf8] sm:$0xff] }
  0x12   :  { %375 = vmatprep.subr.bf16.mxu1 %v417_v3  ;;  %v382_v43 = vpack.c.bf16 %v36_v41, %v35_v40  ;;  %v37_v46 = vld [vmem:[%s581_s2 + $0x70] sm:$0xff]  ;;  %v38_v47 = vld [vmem:[%s581_s2 + $0x78] sm:$0xff]  ;;  %v361_v48 = vpack.c.bf16 %v234_v45, %v233_v44  ;;  %v21_v49 = vld [vmem:[%s580_s1] sm:$0x3] }
  0x13   :  { %v385_v50 = vpack.c.bf16 %v38_v47, %v37_v46  ;;  %v19_v51 = vld [vmem:[%s579_s0] sm:$0x3]  ;;  %v22_v52 = vmax.f32 %v21_v49, 0.0  ;;  %s420_s0 = smov [#allocation3]  }
  0x14   :  { %353 = vmatpush3.bf16.msra.mxu0 %v352_v30  ;;  %v20_v53 = vmax.f32 %v19_v51, 0.0  ;;  %s211_s5 = sshll.u32 %s420_s0, 4  ;;  %s212_s5 = int_to_ptr.vmem [resolvable:$true] %s211_s5 }
  0x15   :  { %377 = vmatpush3.bf16.msra.mxu1 %v376_v31  ;;  %354 = vmatprep.subr.bf16.mxu0 %v417_v3  ;;  %s393_s6 = scalar_lea.vmem %s212_s5, 32  ;;  %p398_p1 = scmp.lt.s32.totalorder %s212_s5, %s212_s5 }
  0x16   :  { %378 = vmatprep.subr.bf16.mxu1 %v417_v3  ;;  %p394_p0 = scmp.ne.s32.totalorder %s212_s5, %s393_s6  ;;  %p399_p2 = scmp.lt.s32.totalorder %s393_s6, %s393_s6 }
  0x18   :  { %356 = vmatpush3.bf16.msra.mxu0 %v355_v36  ;;  %p400_p3 = por %p399_p2, %p398_p1 }
  0x19   :  { %380 = vmatpush3.bf16.msra.mxu1 %v379_v37  ;;  %357 = vmatprep.subr.bf16.mxu0 %v417_v3 }
  0x1a   :  { %381 = vmatprep.subr.bf16.mxu1 %v417_v3  ;;  %p401_p4 = pnand %p400_p3, %p394_p0 }
  0x1c   :  { %359 = vmatpush3.bf16.msra.mxu0 %v358_v42 }
  0x1d   :  { %383 = vmatpush3.bf16.msra.mxu1 %v382_v43  ;;  %360 = vmatprep.subr.bf16.mxu0 %v417_v3 }
  0x1e   :  { %384 = vmatprep.subr.bf16.mxu1 %v417_v3 }
  0x20   :  { %362 = vmatpush3.bf16.msra.mxu0 %v361_v48 }
  0x21   :  { %386 = vmatpush3.bf16.msra.mxu1 %v385_v50 }
  0x23   :  { %302 = vmatmul.mubr.f32.vlgmr.msra.gmra.mrb[0].mxu0 %v22_v52 }
  0x24   :  { %337 = vmatmul.mubr.f32.vlgmr.msra.gmra.mrb[0].mxu1 %v20_v53 }
  0xf6   :  { %v122_v54 = vpop.f32.mrb[0].mxu0 }
  0xf7   :  { %v192_v55 = vpop.f32.mrb[0].mxu1  ;;  %v303_v57 = vpop.f32.mrb[1].mxu0 }
  0xf8   :  { %v193_v58 = vadd.f32 %v192_v55, %v122_v54  ;;  %v338_v59 = vpop.f32.mrb[1].mxu1 }
  0xfa   :  { %v198_v60 = vadd.f32 %v197_v56, %v193_v58 }
  0xfc   :  { %v199_v61 = vand.u32 2147483647, %v198_v60 }
  0xfe   :  { %v200_v62 = vmax.f32 %v199_v61, 1e-12 }
 0x100   :  { %391 = vrcp.f32 %v200_v62 }
 0x10a   :  { %v392_v63 = vpop.eup %391 }
 0x10b   :  { %v202_v0 = vmul.f32 %v392_v63, %v198_v60 }
 0x10d   :  { %204 = vst.msk [vmem:[#allocation3] sm:$0x3] %vm203_vm1, %v202_v0 }
 0x10e   :  { %404 = shalt.err (!%p401_p4)
}
 0x10f   :  { %s405_s8 = scalar_lea.hbm %s583_s4, 32 }
 0x110   :  { %p406_p5 = scmp.ne.s32.totalorder %s583_s4, %s405_s8  ;;  %p409_p6 = scmp.lt.u32.totalorder %s405_s8, %s583_s4 }
 0x112   :  { %p411_p7 = pnand %p409_p6, %p406_p5 }
 0x114   :  { %414 = shalt.err (!%p411_p7)
}
 0x115   :  { %214 = dma.vmem_to_hbm [thread:$0]  %s212_s5, 32, %s583_s4, [#allocation4]  }
 0x116   :  { %415 = dma.done.wait [#allocation4], 32  }
 0x117   :  { %416 = vsyncadd [#allocation4], 4294967264 }
 0x118   :  { %218 = vsyncpa [#allocation4], 1 }

</bundles_post_ra>
